<compile_context>
chip_gen: v6e
topology: v6e:2x2x1
jax: 0.10.0
libtpu: 0.0.40
codegen_flags: <defaults>
</compile_context>

<pallas_src>
import functools

import jax
import jax.numpy as jnp
from jax.experimental import pallas as pl
from jax.experimental.pallas import tpu as pltpu

_LANE = 128      # vreg lane width (last dim)
_SUBLANE = 8     # vreg sublane count (second-to-last dim)


def _round_up(n, m):
    return ((n + m - 1) // m) * m


def _projector_kernel(x_ref, w1_ref, b1_ref, w2_ref, b2_ref, o_ref):
    # x_ref : (TB, P_IN)    f32
    # w1_ref: (P_IN, P_MED) bf16     b1_ref: (1, P_MED) f32
    # w2_ref: (P_MED, P_IN) bf16     b2_ref: (1, P_IN)  f32
    # o_ref : (TB, P_IN)    f32
    x = x_ref[...].astype(w1_ref.dtype)                 # bf16 LHS for MXU
    h = jnp.dot(x, w1_ref[...], preferred_element_type=jnp.float32)
    h = jnp.maximum(h + b1_ref[...], 0.0)               # f32 bias + ReLU (VPU)
    out = jnp.dot(h.astype(w2_ref.dtype), w2_ref[...],  # bf16 MXU, f32 acc
                  preferred_element_type=jnp.float32)
    o_ref[...] = (out + b2_ref[...]).astype(o_ref.dtype)


def prepare_projector_params(w1, b1, w2, b2, *, weight_dtype=jnp.bfloat16):
    """One-time conversion: PyTorch (out, in) weights -> padded (in, out) bf16.

    Called once outside the per-step hot path, so no transpose / reshape /
    cast of the weights is re-executed (and re-read from HBM) on every call.
    """
    medium, input_size = w1.shape
    p_in = _round_up(input_size, _LANE)      # 100 -> 128
    p_med = _round_up(medium, _LANE)         # 300 -> 384

    w1_t = jnp.zeros((p_in, p_med), weight_dtype)
    w1_t = w1_t.at[:input_size, :medium].set(w1.T.astype(weight_dtype))
    w2_t = jnp.zeros((p_med, p_in), weight_dtype)
    w2_t = w2_t.at[:medium, :input_size].set(w2.T.astype(weight_dtype))
    # Biases stay f32 (tiny; keeps bias+ReLU on the f32 VPU path, incl. v5e).
    b1_p = jnp.zeros((1, p_med), jnp.float32).at[:, :medium].set(
        b1.astype(jnp.float32))
    b2_p = jnp.zeros((1, p_in), jnp.float32).at[:, :input_size].set(
        b2.astype(jnp.float32))
    return {"w1": w1_t, "b1": b1_p, "w2": w2_t, "b2": b2_p,
            "input_size": input_size, "medium": medium}


@functools.partial(jax.jit, static_argnames=("input_size",))
def _forward_impl(x, w1, b1, w2, b2, input_size):
    B = x.shape[0]
    p_in, p_med = w1.shape

    # Batch tile: 128 rows per grid step for big batches (fills MXU rows and
    # shards across cores via "parallel"); for small batches one sublane-
    # aligned tile covering the whole (padded) batch.
    tb = _LANE if B >= _LANE else _round_up(max(B, 1), _SUBLANE)
    b_pad = _round_up(B, tb)

    # Zero-pad activations to lane-dense, sublane-aligned shape (cheap: ~KBs).
    x_p = jnp.zeros((b_pad, p_in), x.dtype).at[:B, :input_size].set(x)

    out_p = pl.pallas_call(
        _projector_kernel,
        out_shape=jax.ShapeDtypeStruct((b_pad, p_in), x.dtype),
        grid=(b_pad // tb,),
        in_specs=[
            pl.BlockSpec((tb, p_in), lambda i: (i, 0)),     # x: varies w/ batch
            pl.BlockSpec((p_in, p_med), lambda i: (0, 0)),  # w1: VMEM-resident
            pl.BlockSpec((1, p_med), lambda i: (0, 0)),     # b1: VMEM-resident
            pl.BlockSpec((p_med, p_in), lambda i: (0, 0)),  # w2: VMEM-resident
            pl.BlockSpec((1, p_in), lambda i: (0, 0)),      # b2: VMEM-resident
        ],
        out_specs=pl.BlockSpec((tb, p_in), lambda i: (i, 0)),
        compiler_params=pltpu.CompilerParams(
            dimension_semantics=("parallel",)),
    )(x_p, w1, b1, w2, b2)

    return out_p[:B, :input_size]


def projector_forward(x, params):
    """x: (B, input_size) f32; params from prepare_projector_params()."""
    return _forward_impl(x, params["w1"], params["b1"], params["w2"],
                         params["b2"], input_size=params["input_size"])


def init_projector_params(key, input_size=100, medium=300, dtype=jnp.float32):
    """Deterministic init mimicking nn.Linear's U(-1/sqrt(in), 1/sqrt(in))."""
    k1, k2, k3, k4 = jax.random.split(key, 4)
    lim1 = 1.0 / jnp.sqrt(jnp.array(input_size, dtype))
    lim2 = 1.0 / jnp.sqrt(jnp.array(medium, dtype))
    w1 = jax.random.uniform(k1, (medium, input_size), dtype, -lim1, lim1)
    b1 = jax.random.uniform(k2, (medium,), dtype, -lim1, lim1)
    w2 = jax.random.uniform(k3, (input_size, medium), dtype, -lim2, lim2)
    b2 = jax.random.uniform(k4, (medium and input_size,), dtype, -lim2, lim2)
    return w1, b1, w2, b2


def _reference_mixed(x, w1, b1, w2, b2, weight_dtype=jnp.bfloat16):
    """Plain-JAX reference reproducing the kernel's bf16-operand / f32-acc math."""
    xb = x.astype(weight_dtype)
    h = jnp.dot(xb, w1.T.astype(weight_dtype),
                preferred_element_type=jnp.float32) + b1
    h = jnp.maximum(h, 0.0)
    out = jnp.dot(h.astype(weight_dtype), w2.T.astype(weight_dtype),
                  preferred_element_type=jnp.float32) + b2
    return out


def _reference_f32(x, w1, b1, w2, b2):
    h = jnp.maximum(x @ w1.T + b1, 0.0)
    return h @ w2.T + b2


if __name__ == "__main__":
    key = jax.random.PRNGKey(0)
    kx, kx2, kp = jax.random.split(key, 3)

    input_size, medium = 100, 300
    w1, b1, w2, b2 = init_projector_params(kp, input_size, medium)
    params = prepare_projector_params(w1, b1, w2, b2)   # one-time prep

    # Small batch (single grid step).
    x_small = jax.random.normal(kx, (8, input_size), jnp.float32)
    out_small = jax.block_until_ready(projector_forward(x_small, params))
    assert out_small.shape == (8, input_size)
    ref_small = _reference_mixed(x_small, w1, b1, w2, b2)
    assert jnp.allclose(out_small, ref_small, atol=5e-3, rtol=5e-3)
    # Sanity vs. full-f32 module semantics (looser: bf16 weight quantization).
    assert jnp.allclose(out_small, _reference_f32(x_small, w1, b1, w2, b2),
                        atol=5e-2, rtol=5e-2)

    # Larger, non-multiple-of-128 batch (exercises batch grid + padding).
    x_big = jax.random.normal(kx2, (300, input_size), jnp.float32)
    out_big = jax.block_until_ready(projector_forward(x_big, params))
    assert out_big.shape == (300, input_size)
    ref_big = _reference_mixed(x_big, w1, b1, w2, b2)
    assert jnp.allclose(out_big, ref_big, atol=5e-3, rtol=5e-3)

    print("KERNEL_OK")
</pallas_src>

<mosaic_0001>
module attributes {stable_mosaic.version = 11 : i64} {
  func.func @_projector_kernel(%arg0: i32, %arg1: memref<8x128xf32, #tpu.memory_space<vmem>>, %arg2: memref<128x384xbf16, #tpu.memory_space<vmem>>, %arg3: memref<1x384xf32, #tpu.memory_space<vmem>>, %arg4: memref<384x128xbf16, #tpu.memory_space<vmem>>, %arg5: memref<1x128xf32, #tpu.memory_space<vmem>>, %arg6: memref<8x128xf32, #tpu.memory_space<vmem>>) attributes {dimension_semantics = [#tpu.dimension_semantics<parallel>], iteration_bounds = array<i64: 1>, scalar_prefetch = 0 : i64, scratch_operands = 0 : i64, tpu.core_type = #tpu.core_type<tc>, window_params = [{transform_indices = @transform_0, window_bounds = array<i64: 8, 128>}, {pipeline_mode = #tpu.pipeline_mode<synchronous>, transform_indices = @transform_1, window_bounds = array<i64: 128, 384>}, {pipeline_mode = #tpu.pipeline_mode<synchronous>, transform_indices = @transform_2, window_bounds = array<i64: 1, 384>}, {pipeline_mode = #tpu.pipeline_mode<synchronous>, transform_indices = @transform_3, window_bounds = array<i64: 384, 128>}, {pipeline_mode = #tpu.pipeline_mode<synchronous>, transform_indices = @transform_4, window_bounds = array<i64: 1, 128>}, {transform_indices = @transform_5, window_bounds = array<i64: 8, 128>}]} {
    %c0 = arith.constant 0 : index
    %c0_0 = arith.constant 0 : index
    %0 = vector.load %arg1[%c0, %c0_0] : memref<8x128xf32, #tpu.memory_space<vmem>>, vector<8x128xf32>
    %1 = arith.truncf %0 : vector<8x128xf32> to vector<8x128xbf16>
    %c0_1 = arith.constant 0 : index
    %c0_2 = arith.constant 0 : index
    %2 = vector.load %arg2[%c0_1, %c0_2] : memref<128x384xbf16, #tpu.memory_space<vmem>>, vector<128x384xbf16>
    %cst = arith.constant dense<0.000000e+00> : vector<8x384xf32>
    %3 = tpu.matmul %1, %2, %cst {dimension_numbers = #tpu.dot_dimension_numbers<[1], [0], [0], [1], [0, 0, 1, 1], [], []>} : vector<8x128xbf16>, vector<128x384xbf16>, vector<8x384xf32> -> vector<8x384xf32>
    %c0_3 = arith.constant 0 : index
    %c0_4 = arith.constant 0 : index
    %4 = vector.load %arg3[%c0_3, %c0_4] : memref<1x384xf32, #tpu.memory_space<vmem>>, vector<1x384xf32>
    %5 = vector.broadcast %4 : vector<1x384xf32> to vector<8x384xf32>
    %6 = arith.addf %3, %5 : vector<8x384xf32>
    %cst_5 = arith.constant 0.000000e+00 : f32
    %7 = vector.broadcast %cst_5 : f32 to vector<8x384xf32>
    %8 = arith.maximumf %6, %7 : vector<8x384xf32>
    %9 = arith.truncf %8 : vector<8x384xf32> to vector<8x384xbf16>
    %c0_6 = arith.constant 0 : index
    %c0_7 = arith.constant 0 : index
    %10 = vector.load %arg4[%c0_6, %c0_7] : memref<384x128xbf16, #tpu.memory_space<vmem>>, vector<384x128xbf16>
    %cst_8 = arith.constant dense<0.000000e+00> : vector<8x128xf32>
    %11 = tpu.matmul %9, %10, %cst_8 {dimension_numbers = #tpu.dot_dimension_numbers<[1], [0], [0], [1], [0, 0, 1, 1], [], []>} : vector<8x384xbf16>, vector<384x128xbf16>, vector<8x128xf32> -> vector<8x128xf32>
    %c0_9 = arith.constant 0 : index
    %c0_10 = arith.constant 0 : index
    %12 = vector.load %arg5[%c0_9, %c0_10] : memref<1x128xf32, #tpu.memory_space<vmem>>, vector<1x128xf32>
    %13 = vector.broadcast %12 : vector<1x128xf32> to vector<8x128xf32>
    %14 = arith.addf %11, %13 : vector<8x128xf32>
    %c0_11 = arith.constant 0 : index
    %c0_12 = arith.constant 0 : index
    %15 = vector.load %arg6[%c0_11, %c0_12] : memref<8x128xf32, #tpu.memory_space<vmem>>, vector<8x128xf32>
    tpu.vector_store %arg6[%c0_11, %c0_12], %14 {strides = array<i32>} : memref<8x128xf32, #tpu.memory_space<vmem>>, vector<8x128xf32>,
    return
  }
  func.func @transform_0(%arg0: i32) -> (i32, i32) {
    %c0_i32 = arith.constant 0 : i32
    %c0_i32_0 = arith.constant 0 : i32
    return %arg0, %c0_i32 : i32, i32
  }
  func.func @transform_1(%arg0: i32) -> (i32, i32) {
    %c0_i32 = arith.constant 0 : i32
    %c0_i32_0 = arith.constant 0 : i32
    %c0_i32_1 = arith.constant 0 : i32
    return %c0_i32, %c0_i32_0 : i32, i32
  }
  func.func @transform_2(%arg0: i32) -> (i32, i32) {
    %c0_i32 = arith.constant 0 : i32
    %c0_i32_0 = arith.constant 0 : i32
    %c0_i32_1 = arith.constant 0 : i32
    return %c0_i32, %c0_i32_0 : i32, i32
  }
  func.func @transform_3(%arg0: i32) -> (i32, i32) {
    %c0_i32 = arith.constant 0 : i32
    %c0_i32_0 = arith.constant 0 : i32
    %c0_i32_1 = arith.constant 0 : i32
    return %c0_i32, %c0_i32_0 : i32, i32
  }
  func.func @transform_4(%arg0: i32) -> (i32, i32) {
    %c0_i32 = arith.constant 0 : i32
    %c0_i32_0 = arith.constant 0 : i32
    %c0_i32_1 = arith.constant 0 : i32
    return %c0_i32, %c0_i32_0 : i32, i32
  }
  func.func @transform_5(%arg0: i32) -> (i32, i32) {
    %c0_i32 = arith.constant 0 : i32
    %c0_i32_0 = arith.constant 0 : i32
    return %arg0, %c0_i32 : i32, i32
  }
}

</mosaic_0001>

<bundles_post_ra>
// kernel: _forward_impl.1
= control target key start
LH: loop header
LB: loop body
LE: loop exit
PB: predicated region body
PF: predicated region fallthrough
CT: control target
= control target key end

     0   :  { %10 = vsyncpa [#allocation3], 0  ;;  %s951_s0 = inlined_call_operand.vmem [shape: f32[8,128], index: 0, kind: input, shape index: {}]   ;;  %s952_s1 = inlined_call_operand.hbm [shape: bf16[128,384], index: 1, kind: input, shape index: {}]   ;;  %s953_s2 = inlined_call_operand.vmem [shape: f32[1,384], index: 2, kind: input, shape index: {}]   ;;  %s954_s3 = inlined_call_operand.hbm [shape: bf16[384,128], index: 3, kind: input, shape index: {}]   ;;  %s955_s4 = inlined_call_operand.vmem [shape: f32[1,128], index: 4, kind: input, shape index: {}]   ;;  %s956_s5 = inlined_call_operand.hbm [shape: f32[8,128], index: 5, kind: output, shape index: {}]  }
   0x1   :  { %11 = vsyncpa [#allocation6], 0 }
   0x2   :  { %12 = vsyncpa [#allocation4], 0  ;;  %s873_s18 = smov [#allocation2]  }
   0x3   :  { %s20_s19 = sshll.u32 %s873_s18, 4  ;;  %s21_s19 = int_to_ptr.vmem [resolvable:$true] %s20_s19 }
   0x4   :  { %s815_s20 = scalar_lea.vmem %s21_s19, 3072  ;;  %p820_p1 = scmp.lt.s32.totalorder %s21_s19, %s21_s19 }
   0x5   :  { %p816_p0 = scmp.ne.s32.totalorder %s21_s19, %s815_s20  ;;  %p821_p2 = scmp.lt.s32.totalorder %s815_s20, %s815_s20 }
   0x7   :  { %p822_p3 = por %p821_p2, %p820_p1 }
   0x9   :  { %p823_p4 = pnand %p822_p3, %p816_p0 }
   0xb   :  { %826 = shalt.err (!%p823_p4)
}
   0xc   :  { %s874_s21 = smov 192   ;;  %s875_s22 = smov 12  }
   0xd   :  { %26 = dma.hbm_to_vmem [thread:$0]  %s952_s1, 3072, %s21_s19, [#allocation3], %s874_s21, %s874_s21, %s875_s22  }
   0xe   :  { %s876_s25 = smov [#allocation5]  }
   0xf   :  { %s34_s26 = sshll.u32 %s876_s25, 4  ;;  %s35_s26 = int_to_ptr.vmem [resolvable:$true] %s34_s26 }
  0x10   :  { %s835_s27 = scalar_lea.vmem %s35_s26, 3072  ;;  %p840_p6 = scmp.lt.s32.totalorder %s35_s26, %s35_s26 }
  0x11   :  { %p836_p5 = scmp.ne.s32.totalorder %s35_s26, %s835_s27  ;;  %p841_p7 = scmp.lt.s32.totalorder %s835_s27, %s835_s27 }
  0x13   :  { %p842_p8 = por %p841_p7, %p840_p6 }
  0x15   :  { %p843_p9 = pnand %p842_p8, %p836_p5 }
  0x17   :  { %846 = shalt.err (!%p843_p9)
}
  0x18   :  { %s877_s28 = smov 64   ;;  %s878_s29 = smov 4  }
  0x19   :  { %40 = dma.hbm_to_vmem [thread:$0]  %s954_s3, 3072, %s35_s26, [#allocation6], %s877_s28, %s877_s28, %s878_s29  }
  0x1a   :  { %867 = dma.done.wait [#allocation3], 3072  }
  0x1b   :  { %868 = vsyncadd [#allocation3], 4294964224 }
  0x1c   :  { %869 = dma.done.wait [#allocation6], 3072  }
  0x1d   :  { %870 = vsyncadd [#allocation6], 4294964224  ;;  %v879_v0 = vmov 0.0   ;;  %v880_v1 = vmov 0   ;;  %vm881_vm0 = vmmov 0   ;;  %v50_v26 = vld [vmem:[%s951_s0] sm:$0xff]  ;;  %v86_v52 = vlaneseq }
  0x1e   :  { %701 = vmatprep.subr.bf16.mxu1 %v879_v0  ;;  %261 = vmatprep.mubr.bf16.mxu0 %v880_v1  ;;  %v751_v2 = vld [vmem:[#allocation2 + $0xac] ss:$12 sps:$4 sm:$0xff]   ;;  %v753_v3 = vld [vmem:[#allocation2 + $0xa8] ss:$12 sps:$4 sm:$0xff]   ;;  %v754_v4 = vld [vmem:[#allocation2 + $0xb0] ss:$12 sps:$4 sm:$0xff]   ;;  %v51_v28 = vpack.c.bf16 %v50_v26, %v50_v26 }
  0x1f   :  { %717 = vmatprep.mubr.msk.bf16.mxu1 %vm881_vm0, %v879_v0  ;;  %229 = vmatprep.subr.bf16.mxu0 %v751_v2  ;;  %v755_v5 = vld [vmem:[#allocation2 + $0x94] ss:$12 sps:$4 sm:$0xff]   ;;  %v757_v6 = vld [vmem:[#allocation2 + $0x90] ss:$12 sps:$4 sm:$0xff]   ;;  %v758_v7 = vld [vmem:[#allocation2 + $0x98] ss:$12 sps:$4 sm:$0xff]  }
  0x20   :  { %230 = vmatpush1.bf16.msra.mxu0 %v753_v3  ;;  %702 = vmatpush3.bf16.msra.mxu1 %v754_v4  ;;  %v759_v8 = vld [vmem:[#allocation2 + $0x7c] ss:$12 sps:$4 sm:$0xff]   ;;  %v761_v9 = vld [vmem:[#allocation2 + $0x78] ss:$12 sps:$4 sm:$0xff]   ;;  %v762_v10 = vld [vmem:[#allocation2 + $0x80] ss:$12 sps:$4 sm:$0xff]  }
  0x21   :  { %231 = vmatprep.subr.bf16.mxu0 %v755_v5  ;;  %703 = vmatprep.subr.bf16.mxu1 %v879_v0  ;;  %v763_v11 = vld [vmem:[#allocation2 + $0x64] ss:$12 sps:$4 sm:$0xff]   ;;  %v765_v12 = vld [vmem:[#allocation2 + $0x60] ss:$12 sps:$4 sm:$0xff]   ;;  %v766_v13 = vld [vmem:[#allocation2 + $0x68] ss:$12 sps:$4 sm:$0xff]  }
  0x22   :  { %v767_v14 = vld [vmem:[#allocation2 + $0x4c] ss:$12 sps:$4 sm:$0xff]   ;;  %v769_v15 = vld [vmem:[#allocation2 + $0x48] ss:$12 sps:$4 sm:$0xff]   ;;  %v770_v16 = vld [vmem:[#allocation2 + $0x50] ss:$12 sps:$4 sm:$0xff]  }
  0x23   :  { %v771_v17 = vld [vmem:[#allocation2 + $0x34] ss:$12 sps:$4 sm:$0xff]   ;;  %v773_v18 = vld [vmem:[#allocation2 + $0x30] ss:$12 sps:$4 sm:$0xff]   ;;  %v774_v19 = vld [vmem:[#allocation2 + $0x38] ss:$12 sps:$4 sm:$0xff]  }
  0x24   :  { %232 = vmatpush1.bf16.msra.mxu0 %v757_v6  ;;  %704 = vmatpush3.bf16.msra.mxu1 %v758_v7  ;;  %v775_v20 = vld [vmem:[#allocation2 + $0x1c] ss:$12 sps:$4 sm:$0xff]   ;;  %v777_v21 = vld [vmem:[#allocation2 + $0x18] ss:$12 sps:$4 sm:$0xff]   ;;  %v778_v22 = vld [vmem:[#allocation2 + $0x20] ss:$12 sps:$4 sm:$0xff]  }
  0x25   :  { %233 = vmatprep.subr.bf16.mxu0 %v759_v8  ;;  %705 = vmatprep.subr.bf16.mxu1 %v879_v0  ;;  %v779_v23 = vld [vmem:[#allocation2 + $0x4] ss:$12 sps:$4 sm:$0xff]   ;;  %v781_v24 = vld [vmem:[#allocation2] ss:$12 sps:$4 sm:$0xff]   ;;  %v782_v25 = vld [vmem:[#allocation2 + $0x8] ss:$12 sps:$4 sm:$0xff]  }
  0x26   :  { %v784_v27 = vld [vmem:[#allocation5 + $0x78] sm:$0xff]   ;;  %v787_v31 = vld [vmem:[#allocation5 + $0x70] sm:$0xff]   ;;  %v790_v34 = vld [vmem:[#allocation5 + $0x68] sm:$0xff]   ;;  %v87_v53 = vshrl.u32 %v86_v52, 7  ;;  %s882_s9 = smov [#allocation7]  }
  0x27   :  { %v783_v29 = vld [vmem:[#allocation5 + $0xb8] sm:$0xff]   ;;  %v786_v32 = vld [vmem:[#allocation5 + $0xb0] sm:$0xff]   ;;  %v791_v35 = vld [vmem:[#allocation5 + $0x28] sm:$0xff]   ;;  %s602_s10 = sshll.u32 %s882_s9, 4  ;;  %s603_s10 = int_to_ptr.vmem [resolvable:$true] %s602_s10 }
  0x28   :  { %234 = vmatpush1.bf16.msra.mxu0 %v761_v9  ;;  %706 = vmatpush3.bf16.msra.mxu1 %v762_v10  ;;  %v785_v30 = vld [vmem:[#allocation5 + $0x38] sm:$0xff]   ;;  %v788_v33 = vld [vmem:[#allocation5 + $0x30] sm:$0xff]   ;;  %v789_v36 = vld [vmem:[#allocation5 + $0xa8] sm:$0xff]   ;;  %v88_v54 = vsub.s32 0, %v87_v53  ;;  %v96_v56 = vsub.s32 2, %v87_v53  ;;  %v92_v57 = vsub.s32 1, %v87_v53  ;;  %p852_p11 = scmp.lt.s32.totalorder %s603_s10, %s603_s10 }
  0x29   :  { %235 = vmatprep.subr.bf16.mxu0 %v763_v11  ;;  %707 = vmatprep.subr.bf16.mxu1 %v879_v0  ;;  %v793_v37 = vld [vmem:[#allocation5 + $0x60] sm:$0xff]   ;;  %v796_v40 = vld [vmem:[#allocation5 + $0x58] sm:$0xff]   ;;  %v799_v43 = vld [vmem:[#allocation5 + $0x50] sm:$0xff]   ;;  %s847_s11 = scalar_lea.vmem %s603_s10, 128 }
  0x2a   :  { %v794_v38 = vld [vmem:[#allocation5 + $0x20] sm:$0xff]   ;;  %v797_v41 = vld [vmem:[#allocation5 + $0x18] sm:$0xff]   ;;  %v800_v44 = vld [vmem:[#allocation5 + $0x10] sm:$0xff]   ;;  %p848_p10 = scmp.ne.s32.totalorder %s603_s10, %s847_s11  ;;  %p853_p12 = scmp.lt.s32.totalorder %s847_s11, %s847_s11 }
  0x2b   :  { %v792_v39 = vld [vmem:[#allocation5 + $0xa0] sm:$0xff]   ;;  %v795_v42 = vld [vmem:[#allocation5 + $0x98] sm:$0xff]   ;;  %v798_v45 = vld [vmem:[#allocation5 + $0x90] sm:$0xff]  }
  0x2c   :  { %236 = vmatpush1.bf16.msra.mxu0 %v765_v12  ;;  %708 = vmatpush3.bf16.msra.mxu1 %v766_v13  ;;  %v801_v46 = vld [vmem:[#allocation5 + $0x88] sm:$0xff]   ;;  %v804_v49 = vld [vmem:[#allocation5 + $0x80] sm:$0xff]   ;;  %p854_p13 = por %p853_p12, %p852_p11 }
  0x2d   :  { %237 = vmatprep.subr.bf16.mxu0 %v767_v14  ;;  %709 = vmatprep.subr.bf16.mxu1 %v879_v0  ;;  %v802_v47 = vld [vmem:[#allocation5 + $0x48] sm:$0xff]   ;;  %v805_v50 = vld [vmem:[#allocation5 + $0x40] sm:$0xff]  }
  0x2e   :  { %v803_v48 = vld [vmem:[#allocation5 + $0x8] sm:$0xff]   ;;  %v806_v51 = vld [vmem:[#allocation5] sm:$0xff]   ;;  %p855_p0 = pnand %p854_p13, %p848_p10 }
  0x2f   :  { %v84_v55 = vld [vmem:[%s953_s2] sm:$0x7] }
  0x30   :  { %238 = vmatpush1.bf16.msra.mxu0 %v769_v15  ;;  %710 = vmatpush3.bf16.msra.mxu1 %v770_v16  ;;  %v89_v58 = vrot.slane %v84_v55, %v88_v54  ;;  %v97_v59 = vrot.slane %v84_v55, %v96_v56  ;;  %v93_v60 = vrot.slane %v84_v55, %v92_v57 }
  0x31   :  { %239 = vmatprep.subr.bf16.mxu0 %v771_v17  ;;  %711 = vmatprep.subr.bf16.mxu1 %v879_v0  ;;  %v636_v17 = vld [vmem:[%s955_s4] ss:$0 sm:$0xff] }
  0x34   :  { %240 = vmatpush1.bf16.msra.mxu0 %v773_v18  ;;  %712 = vmatpush3.bf16.msra.mxu1 %v774_v19 }
  0x35   :  { %241 = vmatprep.subr.bf16.mxu0 %v775_v20  ;;  %713 = vmatprep.subr.bf16.mxu1 %v879_v0 }
  0x38   :  { %242 = vmatpush1.bf16.msra.mxu0 %v777_v21  ;;  %714 = vmatpush3.bf16.msra.mxu1 %v778_v22 }
  0x39   :  { %243 = vmatprep.subr.bf16.mxu0 %v779_v23  ;;  %715 = vmatprep.subr.bf16.mxu1 %v879_v0 }
  0x3c   :  { %244 = vmatpush1.bf16.msra.mxu0 %v781_v24  ;;  %716 = vmatpush3.bf16.msra.mxu1 %v782_v25 }
  0x3d   :  { %670 = vmatprep.subr.bf16.mxu0 %v784_v27  ;;  %721 = vmatprep.subr.bf16.mxu1 %v879_v0 }
  0x3f   :  { %262 = vmatmul.mubr.bf16.vlgmr.msra.gmra.mxu0 %v51_v28  ;;  %718 = vmatmul.mubr.bf16.vlgmr.msra.gmra.mxu1 %v51_v28 }
  0x40   :  { %671 = vmatpush3.bf16.msra.mxu0 %v785_v30  ;;  %722 = vmatpush3.bf16.msra.mxu1 %v783_v29 }
  0x41   :  { %672 = vmatprep.subr.bf16.mxu0 %v787_v31  ;;  %723 = vmatprep.subr.bf16.mxu1 %v879_v0 }
  0x42   :  { %737 = vmatprep.mubr.msk.bf16.mxu1 %vm881_vm0, %v879_v0 }
  0x44   :  { %673 = vmatpush3.bf16.msra.mxu0 %v788_v33  ;;  %724 = vmatpush3.bf16.msra.mxu1 %v786_v32 }
  0x45   :  { %674 = vmatprep.subr.bf16.mxu0 %v790_v34  ;;  %725 = vmatprep.subr.bf16.mxu1 %v879_v0 }
  0x48   :  { %675 = vmatpush3.bf16.msra.mxu0 %v791_v35  ;;  %726 = vmatpush3.bf16.msra.mxu1 %v789_v36 }
  0x49   :  { %676 = vmatprep.subr.bf16.mxu0 %v793_v37  ;;  %727 = vmatprep.subr.bf16.mxu1 %v879_v0 }
  0x4c   :  { %677 = vmatpush3.bf16.msra.mxu0 %v794_v38  ;;  %728 = vmatpush3.bf16.msra.mxu1 %v792_v39 }
  0x4d   :  { %678 = vmatprep.subr.bf16.mxu0 %v796_v40  ;;  %729 = vmatprep.subr.bf16.mxu1 %v879_v0 }
  0x50   :  { %679 = vmatpush3.bf16.msra.mxu0 %v797_v41  ;;  %730 = vmatpush3.bf16.msra.mxu1 %v795_v42 }
  0x51   :  { %680 = vmatprep.subr.bf16.mxu0 %v799_v43  ;;  %731 = vmatprep.subr.bf16.mxu1 %v879_v0 }
  0x54   :  { %681 = vmatpush3.bf16.msra.mxu0 %v800_v44  ;;  %732 = vmatpush3.bf16.msra.mxu1 %v798_v45 }
  0x55   :  { %733 = vmatprep.subr.bf16.mxu1 %v879_v0  ;;  %682 = vmatprep.subr.bf16.mxu0 %v802_v47 }
  0x58   :  { %734 = vmatpush3.bf16.msra.mxu1 %v801_v46  ;;  %683 = vmatpush3.bf16.msra.mxu0 %v803_v48 }
  0x59   :  { %735 = vmatprep.subr.bf16.mxu1 %v879_v0  ;;  %684 = vmatprep.subr.bf16.mxu0 %v805_v50 }
  0x5c   :  { %736 = vmatpush3.bf16.msra.mxu1 %v804_v49  ;;  %685 = vmatpush3.bf16.msra.mxu0 %v806_v51 }
  0xff   :  { %v263_v61 = vpop.f32.mrf.mxu0  ;;  %v304_v63 = vpop.f32.mrf.mxu1 }
 0x100   :  { %v264_v62 = vadd.f32 %v263_v61, %v89_v58  ;;  %v305_v0 = vadd.f32 %v304_v63, %v97_v59 }
 0x101   :  { %v265_v1 = vpop.f32.mrf.mxu0  ;;  %v719_v3 = vpop.f32.mrf.mxu1 }
 0x102   :  { %v266_v2 = vadd.f32 %v265_v1, %v93_v60  ;;  %v310_v4 = vmax.f32 %v264_v62, 0.0  ;;  %v312_v5 = vmax.f32 %v305_v0, 0.0 }
 0x103   :  { %v267_v6 = vpop.f32.mrf.mxu0  ;;  %v307_v8 = vpop.f32.mrf.mxu1 }
 0x104   :  { %v311_v7 = vmax.f32 %v266_v2, 0.0  ;;  %v315_v9 = vpack.c.bf16 %v312_v5, %v312_v5  ;;  %v313_v13 = vpack.c.bf16 %v310_v4, %v310_v4 }
 0x105   :  { %v268_v10 = vpop.f32.mrf.mxu0  ;;  %v720_v12 = vpop.f32.mrf.mxu1 }
 0x106   :  { %v314_v11 = vpack.c.bf16 %v311_v7, %v311_v7  ;;  %738 = vmatmul.mubr.bf16.vlgmr.msra.gmra.mxu1 %v315_v9 }
 0x108   :  { %547 = vmatprep.mubr.bf16.mxu0 %v314_v11 }
 0x109   :  { %548 = vmatmul.mubr.bf16.vlgmr.msra.gmra.mxu0 %v313_v13 }
 0x1c6   :  { %v589_v14 = vpop.f32.mrf.mxu1 }
 0x1c8   :  { %v739_v16 = vpop.f32.mrf.mxu1 }
 0x1c9   :  { %v686_v15 = vpop.f32.mrf.mxu0 }
 0x1ca   :  { %v592_v19 = vpop.f32.mrf.mxu1 }
 0x1cb   :  { %v687_v18 = vpop.f32.mrf.mxu0 }
 0x1cc   :  { %v688_v20 = vadd.f32 %v687_v18, %v686_v15  ;;  %v740_v22 = vpop.f32.mrf.mxu1 }
 0x1cd   :  { %v689_v21 = vpop.f32.mrf.mxu0 }
 0x1ce   :  { %v550_v23 = vadd.f32 %v688_v20, %v636_v17 }
 0x1cf   :  { %v690_v24 = vpop.f32.mrf.mxu0 }
 0x1d0   :  { %v590_v25 = vadd.f32 %v589_v14, %v550_v23 }
 0x1d2   :  { %595 = vst [vmem:[#allocation7] sm:$0xff] %v590_v25 }
 0x1d3   :  { %858 = shalt.err (!%p855_p0)
}
 0x1d4   :  { %605 = dma.vmem_to_hbm [thread:$0]  %s603_s10, 128, %s956_s5, [#allocation4]  }
 0x1d5   :  { %871 = dma.done.wait [#allocation4], 128  }
 0x1d6   :  { %872 = vsyncadd [#allocation4], 4294967168 }
 0x1d7   :  { %609 = vsyncpa [#allocation3], 1 }
 0x1d8   :  { %610 = vsyncpa [#allocation6], 1 }
 0x1d9   :  { %611 = vsyncpa [#allocation4], 1 }

</bundles_post_ra>
